<compile_context>
chip_gen: v7x
topology: tpu7x:2x2x1
jax: 0.10.0
libtpu: 0.0.40
codegen_flags: <defaults>
</compile_context>

<pallas_src>
import jax
import jax.numpy as jnp
from jax.experimental import pallas as pl
from jax.experimental.pallas import tpu as pltpu


def _edge_decoder_kernel(idx_ref, src_t_ref, dst_t_ref, w1_ref, b1_ref,
                         w2t_ref, b2_ref, o_ref):
    # idx_ref:   (2, TE) int32 -- row 0 = src node ids, row 1 = dst node ids.
    # src_t_ref: (D, N_src)  dst_t_ref: (D, N_dst)  (feature-major, VMEM resident)
    # w1_ref: (H, D)  b1_ref: (H, 1)  w2t_ref: (H, O)  b2_ref: (O, 1)
    # o_ref:  (O, TE) -- lane-dense output (edges on lanes).
    n_src = src_t_ref.shape[1]
    n_dst = dst_t_ref.shape[1]
    te = o_ref.shape[-1]

    ids = idx_ref[...]                               # (2, TE) int32
    src_ids = ids[0:1, :]                            # (1, TE)
    dst_ids = ids[1:2, :]                            # (1, TE)

    # One-hot MXU gather: onehot[n, e] = (id[e] == n); xs = table^T @ onehot.
    # Out-of-range / padded ids give an all-zero column (silent-zero semantics,
    # same as before); the padded tail is sliced off in the wrapper.
    oh_src = (jax.lax.broadcasted_iota(jnp.int32, (n_src, te), 0) == src_ids
              ).astype(jnp.float32)                                            # (N_src, TE)
    xs = jnp.dot(src_t_ref[...], oh_src, preferred_element_type=jnp.float32)   # (D, TE)
    oh_dst = (jax.lax.broadcasted_iota(jnp.int32, (n_dst, te), 0) == dst_ids
              ).astype(jnp.float32)                                            # (N_dst, TE)
    xd = jnp.dot(dst_t_ref[...], oh_dst, preferred_element_type=jnp.float32)   # (D, TE)

    x = xs * xd                                                                # (D, TE)
    h = jnp.dot(w1_ref[...], x, preferred_element_type=jnp.float32) + b1_ref[...]  # (H, TE)
    # dropout -> identity (eval mode)
    h = jnp.maximum(h, 0.0)                                                    # ReLU

    if o_ref.shape[0] == 1:
        # O == 1: weighted sublane reduction on VPU/XLU instead of an M=1 MXU matmul.
        y = jnp.sum(w2t_ref[...] * h, axis=0, keepdims=True) + b2_ref[...]     # (1, TE)
    else:
        y = jax.lax.dot_general(w2t_ref[...], h, (((0,), (0,)), ((), ())),
                                preferred_element_type=jnp.float32) + b2_ref[...]
    o_ref[...] = jax.nn.sigmoid(y).astype(o_ref.dtype)                         # lane-dense store


def _num_tensorcores_per_chip():
    # Megacore chips (v4, v7x) expose 2 TensorCores per device; the 'parallel'
    # grid axis shards across them, so keep >= 2 grid steps there.
    try:
        kind = jax.devices()[0].device_kind.lower()
    except Exception:
        return 1
    return 2 if any(t in kind for t in ("v7", "7x", "v4")) else 1


def _pick_tiling(num_edges, num_cores, *, tile_cap=512, single_step_cap=768):
    """Pick (tile_e, e_pad): tile_e a multiple of 128, e_pad a multiple of tile_e.

    Single-TC chips: one grid step for small E (avoid per-step overhead).
    Megacore chips: at least num_cores steps, balanced across cores.
    tile_cap keeps the (D, TILE_E) f32 intermediates out of vreg-spill range.
    """
    e128 = pl.cdiv(num_edges, 128) * 128
    if num_cores == 1 and e128 <= single_step_cap:
        return e128, e128
    steps = max(num_cores, pl.cdiv(e128, tile_cap))
    steps = pl.cdiv(steps, num_cores) * num_cores
    tile_e = max(128, pl.cdiv(pl.cdiv(e128, steps), 128) * 128)
    e_pad = pl.cdiv(num_edges, tile_e) * tile_e
    return tile_e, e_pad


def mask_edge_decoder(dst_embs, src_embs, edge_indices, params):
    """Pallas implementation of MaskEdgeDecoder.forward (eval mode).

    dst_embs: [N_dst, D] f32
    src_embs: [N_src, D] f32
    edge_indices: [2, E] int (row 0 -> index into src_embs, row 1 -> dst_embs)
    params: dict with w1 [H, D], b1 [H], w2 [O, H], b2 [O]  (PyTorch layout)
    returns: [E, O] f32 sigmoid scores
    """
    src_idx = edge_indices[0].astype(jnp.int32)
    dst_idx = edge_indices[1].astype(jnp.int32)
    E = int(src_idx.shape[0])
    D = int(src_embs.shape[1])
    H = int(params["w1"].shape[0])
    O = int(params["w2"].shape[0])
    n_src = int(src_embs.shape[0])
    n_dst = int(dst_embs.shape[0])

    num_cores = _num_tensorcores_per_chip()
    tile_e, e_pad = _pick_tiling(E, num_cores)
    if e_pad != E:
        pad = e_pad - E
        # Pad the cheap index vectors (with valid index 0), not gathered slabs.
        src_idx = jnp.pad(src_idx, (0, pad))
        dst_idx = jnp.pad(dst_idx, (0, pad))
    edge_ids = jnp.stack([src_idx, dst_idx], axis=0)        # (2, E_pad): one DMA/step

    # Feature-major copies of the embedding tables (D on sublanes, nodes on
    # lanes) so the gathered tile is (D, TILE_E): edges-on-lanes.
    src_t = src_embs.T.astype(jnp.float32)                  # (D, N_src)
    dst_t = dst_embs.T.astype(jnp.float32)                  # (D, N_dst)

    w1 = params["w1"].astype(jnp.float32)                   # (H, D)   (PyTorch layout)
    b1 = params["b1"].reshape(H, 1).astype(jnp.float32)     # (H, 1)
    w2t = params["w2"].T.astype(jnp.float32)                # (H, O)   ready for VPU epilogue
    b2 = params["b2"].reshape(O, 1).astype(jnp.float32)     # (O, 1)

    grid = (e_pad // tile_e,)

    # VMEM budget: double-buffered inputs + output + slack for intermediates.
    resident = 2 * 4 * (2 * tile_e + (n_src + n_dst) * D
                        + H * D + H + H * O + O + O * tile_e)
    intermediates = 4 * tile_e * (2 * D + n_src + n_dst + 2 * H + 2 * O)
    vmem_needed = resident + intermediates
    cp_kwargs = dict(dimension_semantics=("parallel",))
    if vmem_needed > (12 << 20):
        # Only raise the scoped limit when the resident tables actually need it.
        cp_kwargs["vmem_limit_bytes"] = int(min(vmem_needed + (4 << 20), 64 << 20))

    cost = pl.CostEstimate(
        flops=2 * e_pad * (D * (n_src + n_dst) + H * D + O * H) + e_pad * D,
        transcendentals=e_pad * O,
        bytes_accessed=4 * (2 * e_pad + (n_src + n_dst) * D
                            + H * D + H + H * O + O + O * e_pad),
    )

    out = pl.pallas_call(
        _edge_decoder_kernel,
        out_shape=jax.ShapeDtypeStruct((O, e_pad), jnp.float32),
        grid_spec=pltpu.PrefetchScalarGridSpec(
            num_scalar_prefetch=0,
            grid=grid,
            in_specs=[
                pl.BlockSpec((2, tile_e), lambda i: (0, i)),   # packed edge ids
                pl.BlockSpec((D, n_src), lambda i: (0, 0)),    # src table^T (resident)
                pl.BlockSpec((D, n_dst), lambda i: (0, 0)),    # dst table^T (resident)
                pl.BlockSpec((H, D), lambda i: (0, 0)),        # W1
                pl.BlockSpec((H, 1), lambda i: (0, 0)),        # b1
                pl.BlockSpec((H, O), lambda i: (0, 0)),        # W2^T
                pl.BlockSpec((O, 1), lambda i: (0, 0)),        # b2
            ],
            out_specs=pl.BlockSpec((O, tile_e), lambda i: (0, i)),  # lane-dense
        ),
        compiler_params=pltpu.CompilerParams(**cp_kwargs),
        cost_estimate=cost,
    )(edge_ids, src_t, dst_t, w1, b1, w2t, b2)

    return out[:, :E].T    # (E, O), matching the PyTorch module's output


def _reference(dst_embs, src_embs, edge_indices, params):
    src, dst = edge_indices[0], edge_indices[1]
    x = src_embs[src] * dst_embs[dst]
    x = x @ params["w1"].T + params["b1"]
    x = jnp.maximum(x, 0.0)
    x = x @ params["w2"].T + params["b2"]
    return jax.nn.sigmoid(x)


if __name__ == "__main__":
    key = jax.random.PRNGKey(0)
    k1, k2, k3, k4, k5, k6, k7, k8 = jax.random.split(key, 8)

    # Small shapes consistent with the module.
    input_dim = 32
    hidden = input_dim // 2      # 16
    output_dim = 1
    n_src, n_dst = 16, 16
    num_edges = 600              # exercises padding and (on v7x) a 2-step grid

    src_embs = jax.random.normal(k1, (n_src, input_dim), dtype=jnp.float32)
    dst_embs = jax.random.normal(k2, (n_dst, input_dim), dtype=jnp.float32)
    edge_indices = jnp.stack(
        [
            jax.random.randint(k3, (num_edges,), 0, n_src),
            jax.random.randint(k4, (num_edges,), 0, n_dst),
        ],
        axis=0,
    ).astype(jnp.int32)

    # Deterministic parameter init (shapes from nn.Linear: weight [out, in]).
    bound1 = 1.0 / (input_dim ** 0.5)
    bound2 = 1.0 / (hidden ** 0.5)
    params = {
        "w1": jax.random.uniform(k5, (hidden, input_dim), jnp.float32, -bound1, bound1),
        "b1": jax.random.uniform(k6, (hidden,), jnp.float32, -bound1, bound1),
        "w2": jax.random.uniform(k7, (output_dim, hidden), jnp.float32, -bound2, bound2),
        "b2": jax.random.uniform(k8, (output_dim,), jnp.float32, -bound2, bound2),
    }

    out = mask_edge_decoder(dst_embs, src_embs, edge_indices, params)
    out = jax.block_until_ready(out)

    ref = _reference(dst_embs, src_embs, edge_indices, params)
    assert out.shape == (num_edges, output_dim)
    assert jnp.allclose(out, ref, atol=1e-5, rtol=1e-5), "mismatch vs reference"

    print("KERNEL_OK")
</pallas_src>

<mosaic_0001>
module attributes {stable_mosaic.version = 11 : i64} {
  func.func @_edge_decoder_kernel(%arg0: i32, %arg1: memref<2x640xi32, #tpu.memory_space<vmem>>, %arg2: memref<32x16xf32, #tpu.memory_space<vmem>>, %arg3: memref<32x16xf32, #tpu.memory_space<vmem>>, %arg4: memref<16x32xf32, #tpu.memory_space<vmem>>, %arg5: memref<16x1xf32, #tpu.memory_space<vmem>>, %arg6: memref<16x1xf32, #tpu.memory_space<vmem>>, %arg7: memref<1x1xf32, #tpu.memory_space<vmem>>, %arg8: memref<1x640xf32, #tpu.memory_space<vmem>>) attributes {dimension_semantics = [#tpu.dimension_semantics<parallel>], iteration_bounds = array<i64: 1>, scalar_prefetch = 0 : i64, scratch_operands = 0 : i64, tpu.core_type = #tpu.core_type<tc>, window_params = [{transform_indices = @transform_0, window_bounds = array<i64: 2, 640>}, {pipeline_mode = #tpu.pipeline_mode<synchronous>, transform_indices = @transform_1, window_bounds = array<i64: 32, 16>}, {pipeline_mode = #tpu.pipeline_mode<synchronous>, transform_indices = @transform_2, window_bounds = array<i64: 32, 16>}, {pipeline_mode = #tpu.pipeline_mode<synchronous>, transform_indices = @transform_3, window_bounds = array<i64: 16, 32>}, {pipeline_mode = #tpu.pipeline_mode<synchronous>, transform_indices = @transform_4, window_bounds = array<i64: 16, 1>}, {pipeline_mode = #tpu.pipeline_mode<synchronous>, transform_indices = @transform_5, window_bounds = array<i64: 16, 1>}, {pipeline_mode = #tpu.pipeline_mode<synchronous>, transform_indices = @transform_6, window_bounds = array<i64: 1, 1>}, {transform_indices = @transform_7, window_bounds = array<i64: 1, 640>}]} {
    %c0 = arith.constant 0 : index
    %c0_0 = arith.constant 0 : index
    %0 = vector.load %arg1[%c0, %c0_0] : memref<2x640xi32, #tpu.memory_space<vmem>>, vector<2x640xi32>
    %1 = vector.extract_strided_slice %0 {offsets = [0, 0], sizes = [1, 640], strides = [1, 1]} : vector<2x640xi32> to vector<1x640xi32>
    %2 = vector.extract_strided_slice %0 {offsets = [1, 0], sizes = [1, 640], strides = [1, 1]} : vector<2x640xi32> to vector<1x640xi32>
    %3 = tpu.iota {dimensions = array<i32: 0>} : vector<16x640xi32>
    %4 = vector.broadcast %1 : vector<1x640xi32> to vector<16x640xi32>
    %5 = arith.cmpi eq, %3, %4 : vector<16x640xi32>
    %6 = arith.extui %5 : vector<16x640xi1> to vector<16x640xi32>
    %7 = arith.sitofp %6 : vector<16x640xi32> to vector<16x640xf32>
    %c0_1 = arith.constant 0 : index
    %c0_2 = arith.constant 0 : index
    %8 = vector.load %arg2[%c0_1, %c0_2] : memref<32x16xf32, #tpu.memory_space<vmem>>, vector<32x16xf32>
    %cst = arith.constant dense<0.000000e+00> : vector<32x640xf32>
    %9 = tpu.matmul %8, %7, %cst {dimension_numbers = #tpu.dot_dimension_numbers<[1], [0], [0], [1], [0, 0, 1, 1], [], []>} : vector<32x16xf32>, vector<16x640xf32>, vector<32x640xf32> -> vector<32x640xf32>
    %10 = tpu.iota {dimensions = array<i32: 0>} : vector<16x640xi32>
    %11 = vector.broadcast %2 : vector<1x640xi32> to vector<16x640xi32>
    %12 = arith.cmpi eq, %10, %11 : vector<16x640xi32>
    %13 = arith.extui %12 : vector<16x640xi1> to vector<16x640xi32>
    %14 = arith.sitofp %13 : vector<16x640xi32> to vector<16x640xf32>
    %c0_3 = arith.constant 0 : index
    %c0_4 = arith.constant 0 : index
    %15 = vector.load %arg3[%c0_3, %c0_4] : memref<32x16xf32, #tpu.memory_space<vmem>>, vector<32x16xf32>
    %cst_5 = arith.constant dense<0.000000e+00> : vector<32x640xf32>
    %16 = tpu.matmul %15, %14, %cst_5 {dimension_numbers = #tpu.dot_dimension_numbers<[1], [0], [0], [1], [0, 0, 1, 1], [], []>} : vector<32x16xf32>, vector<16x640xf32>, vector<32x640xf32> -> vector<32x640xf32>
    %17 = arith.mulf %9, %16 : vector<32x640xf32>
    %c0_6 = arith.constant 0 : index
    %c0_7 = arith.constant 0 : index
    %18 = vector.load %arg4[%c0_6, %c0_7] : memref<16x32xf32, #tpu.memory_space<vmem>>, vector<16x32xf32>
    %cst_8 = arith.constant dense<0.000000e+00> : vector<16x640xf32>
    %19 = tpu.matmul %18, %17, %cst_8 {dimension_numbers = #tpu.dot_dimension_numbers<[1], [0], [0], [1], [0, 0, 1, 1], [], []>} : vector<16x32xf32>, vector<32x640xf32>, vector<16x640xf32> -> vector<16x640xf32>
    %c0_9 = arith.constant 0 : index
    %c0_10 = arith.constant 0 : index
    %20 = vector.load %arg5[%c0_9, %c0_10] : memref<16x1xf32, #tpu.memory_space<vmem>>, vector<16x1xf32>
    %21 = vector.broadcast %20 : vector<16x1xf32> to vector<16x640xf32>
    %22 = arith.addf %19, %21 : vector<16x640xf32>
    %cst_11 = arith.constant 0.000000e+00 : f32
    %23 = vector.broadcast %cst_11 : f32 to vector<16x640xf32>
    %24 = arith.maximumf %22, %23 : vector<16x640xf32>
    %c0_12 = arith.constant 0 : index
    %c0_13 = arith.constant 0 : index
    %25 = vector.load %arg6[%c0_12, %c0_13] : memref<16x1xf32, #tpu.memory_space<vmem>>, vector<16x1xf32>
    %26 = vector.broadcast %25 : vector<16x1xf32> to vector<16x640xf32>
    %27 = arith.mulf %26, %24 : vector<16x640xf32>
    %cst_14 = arith.constant dense<0.000000e+00> : vector<640xf32>
    %28 = vector.multi_reduction <add>, %27, %cst_14 [0] : vector<16x640xf32> to vector<640xf32>
    %29 = vector.shape_cast %28 : vector<640xf32> to vector<1x640xf32>
    %c0_15 = arith.constant 0 : index
    %c0_16 = arith.constant 0 : index
    %30 = vector.load %arg7[%c0_15, %c0_16] : memref<1x1xf32, #tpu.memory_space<vmem>>, vector<1x1xf32>
    %31 = vector.broadcast %30 : vector<1x1xf32> to vector<1x640xf32>
    %32 = arith.addf %29, %31 : vector<1x640xf32>
    %33 = arith.negf %32 : vector<1x640xf32>
    %34 = math.exp %33 : vector<1x640xf32>
    %cst_17 = arith.constant 1.000000e+00 : f32
    %35 = vector.broadcast %cst_17 : f32 to vector<1x640xf32>
    %36 = arith.addf %35, %34 : vector<1x640xf32>
    %37 = arith.divf %35, %36 : vector<1x640xf32>
    %c0_18 = arith.constant 0 : index
    %c0_19 = arith.constant 0 : index
    %38 = vector.load %arg8[%c0_18, %c0_19] : memref<1x640xf32, #tpu.memory_space<vmem>>, vector<1x640xf32>
    tpu.vector_store %arg8[%c0_18, %c0_19], %37 {strides = array<i32>} : memref<1x640xf32, #tpu.memory_space<vmem>>, vector<1x640xf32>,
    return
  }
  func.func @transform_0(%arg0: i32) -> (i32, i32) {
    %c0_i32 = arith.constant 0 : i32
    %c0_i32_0 = arith.constant 0 : i32
    return %c0_i32, %arg0 : i32, i32
  }
  func.func @transform_1(%arg0: i32) -> (i32, i32) {
    %c0_i32 = arith.constant 0 : i32
    %c0_i32_0 = arith.constant 0 : i32
    %c0_i32_1 = arith.constant 0 : i32
    return %c0_i32, %c0_i32_0 : i32, i32
  }
  func.func @transform_2(%arg0: i32) -> (i32, i32) {
    %c0_i32 = arith.constant 0 : i32
    %c0_i32_0 = arith.constant 0 : i32
    %c0_i32_1 = arith.constant 0 : i32
    return %c0_i32, %c0_i32_0 : i32, i32
  }
  func.func @transform_3(%arg0: i32) -> (i32, i32) {
    %c0_i32 = arith.constant 0 : i32
    %c0_i32_0 = arith.constant 0 : i32
    %c0_i32_1 = arith.constant 0 : i32
    return %c0_i32, %c0_i32_0 : i32, i32
  }
  func.func @transform_4(%arg0: i32) -> (i32, i32) {
    %c0_i32 = arith.constant 0 : i32
    %c0_i32_0 = arith.constant 0 : i32
    %c0_i32_1 = arith.constant 0 : i32
    return %c0_i32, %c0_i32_0 : i32, i32
  }
  func.func @transform_5(%arg0: i32) -> (i32, i32) {
    %c0_i32 = arith.constant 0 : i32
    %c0_i32_0 = arith.constant 0 : i32
    %c0_i32_1 = arith.constant 0 : i32
    return %c0_i32, %c0_i32_0 : i32, i32
  }
  func.func @transform_6(%arg0: i32) -> (i32, i32) {
    %c0_i32 = arith.constant 0 : i32
    %c0_i32_0 = arith.constant 0 : i32
    %c0_i32_1 = arith.constant 0 : i32
    return %c0_i32, %c0_i32_0 : i32, i32
  }
  func.func @transform_7(%arg0: i32) -> (i32, i32) {
    %c0_i32 = arith.constant 0 : i32
    %c0_i32_0 = arith.constant 0 : i32
    return %c0_i32, %arg0 : i32, i32
  }
}

</mosaic_0001>

<bundles_post_ra>
// kernel: tpu_custom_call.1
= control target key start
LH: loop header
LB: loop body
LE: loop exit
PB: predicated region body
PF: predicated region fallthrough
CT: control target
= control target key end

     0   :  { %s1645_s0 = inlined_call_operand.vmem [shape: s32[2,640], index: 0, kind: input, shape index: {}]   ;;  %s1646_s1 = inlined_call_operand.vmem [shape: f32[32,16], index: 1, kind: input, shape index: {}]   ;;  %s1647_s2 = inlined_call_operand.vmem [shape: f32[32,16], index: 2, kind: input, shape index: {}]   ;;  %s1648_s3 = inlined_call_operand.vmem [shape: f32[16,32], index: 3, kind: input, shape index: {}]   ;;  %s1649_s4 = inlined_call_operand.vmem [shape: f32[16,1], index: 4, kind: input, shape index: {}]   ;;  %s1650_s5 = inlined_call_operand.vmem [shape: f32[16,1], index: 5, kind: input, shape index: {}]   ;;  %s1651_s6 = inlined_call_operand.<no memory space> [shape: f32[1,1], index: 6, kind: input, shape index: {}]   ;;  %s1652_s7 = inlined_call_operand.hbm [shape: f32[1,640], index: 7, kind: output, shape index: {}]  }
   0x1   :  { %v12_v0 = vstv %s1651_s6 }
   0x2   :  { %13 = vst [vmem:[#allocation2] sm:$0x1] %v12_v0 }
   0x3   :  { %v31_v1 = vlaneseq  ;;  %v1402_v2 = vmov 0.0   ;;  %v1455_v3 = vld [vmem:[%s1645_s0] sm:$0xff]  ;;  %v30_v5 = vld [vmem:[%s1645_s0 + $0x8] sm:$0x3] }
   0x4   :  { %185 = vmatprep.mubr.f32.mxu0 %v1402_v2  ;;  %274 = vmatprep.mubr.f32.mxu1 %v1402_v2 }
   0x5   :  { %v1458_v4 = vshrl.u32 %v31_v1, 7 }
   0x6   :  { %14 = vsyncpa [#allocation4], 0  ;;  %v1403_v30 = vmov 1.0|1.0   ;;  %v104_v31 = vld [vmem:[%s1646_s1] sm:$0xff]  ;;  %v105_v35 = vld [vmem:[%s1646_s1 + $0x8] sm:$0xff] }
   0x7   :  { %v1464_v6 = vadd.s32 8, %v1458_v4  ;;  %v1467_v7 = vsub.s32 0, %v1458_v4  ;;  %v40_v8 = vsub.s32 2, %v1458_v4  ;;  %v48_v9 = vsub.s32 6, %v1458_v4  ;;  %v106_v38 = vld [vmem:[%s1646_s1 + $0x10] sm:$0xff]  ;;  %v107_v40 = vld [vmem:[%s1646_s1 + $0x18] sm:$0xff] }
   0x8   :  { %v44_v10 = vsub.s32 4, %v1458_v4  ;;  %v1473_v11 = vsub.s32 1, %v1458_v4  ;;  %v390_v12 = vsub.s32 3, %v1458_v4  ;;  %v398_v13 = vsub.s32 7, %v1458_v4  ;;  %v454_v41 = vld [vmem:[%s1647_s2] sm:$0xff]  ;;  %v455_v42 = vld [vmem:[%s1647_s2 + $0x8] sm:$0xff] }
   0x9   :  { %v41_v14 = vrot.slane %v1455_v3, %v40_v8  ;;  %v49_v15 = vrot.slane %v1455_v3, %v48_v9  ;;  %v37_v16 = vrot.slane %v1455_v3, %v1467_v7  ;;  %v53_v17 = vrot.slane %v30_v5, %v1467_v7  ;;  %v456_v43 = vld [vmem:[%s1647_s2 + $0x10] sm:$0xff]  ;;  %v457_v44 = vld [vmem:[%s1647_s2 + $0x18] sm:$0xff]  ;;  %v755_v45 = vld [vmem:[%s1649_s4] sm:$0xff] }
   0xa   :  { %v45_v18 = vrot.slane %v1455_v3, %v44_v10  ;;  %v391_v19 = vrot.slane %v1455_v3, %v390_v12  ;;  %v387_v20 = vrot.slane %v1455_v3, %v1473_v11  ;;  %v399_v21 = vrot.slane %v1455_v3, %v398_v13  ;;  %v1013_v46 = vld [vmem:[%s1650_s5] sm:$0xff]  ;;  %v756_v48 = vld [vmem:[%s1649_s4 + $0x8] sm:$0xff] }
   0xb   :  { %v61_v22 = vrot.slane %v41_v14, %v1467_v7  ;;  %v69_v23 = vrot.slane %v49_v15, %v1467_v7  ;;  %v57_v24 = vrot.slane %v37_v16, %v1467_v7  ;;  %v73_v25 = vrot.slane %v53_v17, %v1467_v7  ;;  %v1014_v49 = vld [vmem:[%s1650_s5 + $0x8] sm:$0xff]  ;;  %v1070_v50 = vld [vmem:[#allocation2] sm:$0x1] }
   0xc   :  { %v65_v26 = vrot.slane %v45_v18, %v1467_v7  ;;  %v411_v27 = vrot.slane %v391_v19, %v1473_v11  ;;  %v407_v28 = vrot.slane %v387_v20, %v1473_v11  ;;  %v419_v29 = vrot.slane %v399_v21, %v1473_v11 }
   0xd   :  { %vm75_vm0 = vcmp.eq.s32.totalorder %v1458_v4, %v61_v22  ;;  %vm80_vm1 = vcmp.eq.s32.totalorder %v1464_v6, %v61_v22  ;;  %vm77_vm2 = vcmp.eq.s32.totalorder %v1458_v4, %v69_v23  ;;  %vm82_vm3 = vcmp.eq.s32.totalorder %v1464_v6, %v69_v23 }
   0xe   :  { %vm1303_vm4 = vmpackc.low %vm80_vm1, %vm75_vm0  ;;  %vm74_vm5 = vcmp.eq.s32.totalorder %v1458_v4, %v57_v24  ;;  %vm79_vm6 = vcmp.eq.s32.totalorder %v1464_v6, %v57_v24  ;;  %vm76_vm7 = vcmp.eq.s32.totalorder %v1458_v4, %v65_v26  ;;  %vm81_vm8 = vcmp.eq.s32.totalorder %v1464_v6, %v65_v26 }
   0xf   :  { %1304 = vmatprep.subr.msk.bf16.mxu0 %vm1303_vm4, %v1403_v30  ;;  %vm1307_vm9 = vmpackc.low %vm82_vm3, %vm77_vm2  ;;  %vm78_vm10 = vcmp.eq.s32.totalorder %v1458_v4, %v73_v25  ;;  %vm83_vm11 = vcmp.eq.s32.totalorder %v1464_v6, %v73_v25  ;;  %vm425_vm13 = vcmp.eq.s32.totalorder %v1458_v4, %v411_v27  ;;  %vm430_vm14 = vcmp.eq.s32.totalorder %v1464_v6, %v411_v27 }
  0x10   :  { %1308 = vmatprep.subr.msk.bf16.mxu1 %vm1307_vm9, %v1403_v30  ;;  %vm1305_vm12 = vmpackc.low %vm79_vm6, %vm74_vm5  ;;  %vm108_vm0 = vcmask 130048   ;;  %vm424_vm1 = vcmp.eq.s32.totalorder %v1458_v4, %v407_v28  ;;  %vm429_vm2 = vcmp.eq.s32.totalorder %v1464_v6, %v407_v28  ;;  %v403_v32 = vrot.slane %v30_v5, %v1473_v11 }
  0x11   :  { %1306 = vmatpush1.bf16.msk.msra.mxu0 %vm1305_vm12, %v1403_v30  ;;  %vm1309_vm15 = vmpackc.low %vm81_vm8, %vm76_vm7  ;;  %vm427_vm4 = vcmp.eq.s32.totalorder %v1458_v4, %v419_v29  ;;  %vm432_vm5 = vcmp.eq.s32.totalorder %v1464_v6, %v419_v29  ;;  %v394_v33 = vsub.s32 5, %v1458_v4  ;;  %v1404_v47 = vmov 0  }
  0x12   :  { %1310 = vmatpush1.bf16.msk.msra.mxu1 %vm1309_vm15, %v1403_v30  ;;  %vm1311_vm3 = vmpackc.low %vm83_vm11, %vm78_vm10  ;;  %v423_v34 = vrot.slane %v403_v32, %v1473_v11  ;;  %1356 = vset.pattern.permute.xlu0 %v1404_v47  ;;  %vm767_vm15 = vcmask 261120  }
  0x13   :  { %1312 = vmatprep.subr.msk.bf16.mxu0 %vm1311_vm3, %v1403_v30  ;;  %vm1315_vm6 = vmpackc.low %vm430_vm14, %vm425_vm13  ;;  %v395_v37 = vrot.slane %v1455_v3, %v394_v33  ;;  %1357 = vset.pattern.permute.xlu1 %v1404_v47 }
  0x14   :  { %1193 = vmatmul.mubr.msk.f32.vlgmr.msra.gmra.mrb[0].mxu0 %vm108_vm0, %v104_v31  ;;  %1316 = vmatprep.subr.msk.bf16.mxu1 %vm1315_vm6, %v1403_v30  ;;  %vm1317_vm7 = vmpackc.low %vm429_vm2, %vm424_vm1  ;;  %vm428_vm9 = vcmp.eq.s32.totalorder %v1458_v4, %v423_v34  ;;  %vm433_vm10 = vcmp.eq.s32.totalorder %v1464_v6, %v423_v34 }
  0x15   :  { %1201 = vmatmul.mubr.msk.f32.vlgmr.msra.gmra.mrb[0].mxu1 %vm108_vm0, %v104_v31  ;;  %1314 = vmatpush3.bf16.msk.msra.mxu0 %vm1311_vm3, %v1403_v30  ;;  %vm1319_vm8 = vmpackc.low %vm432_vm5, %vm427_vm4  ;;  %v415_v39 = vrot.slane %v395_v37, %v1473_v11 }
  0x16   :  { %191 = vmatprep.mubr.f32.mxu0 %v1402_v2  ;;  %280 = vmatprep.mubr.f32.mxu1 %v1402_v2  ;;  %vm1533_vm11 = vmpackc.low %vm433_vm10, %vm428_vm9 }
  0x17   :  { %1318 = vmatpush1.bf16.msk.msra.mxu1 %vm1317_vm7, %v1403_v30  ;;  %1320 = vmatprep.subr.msk.bf16.mxu0 %vm1319_vm8, %v1403_v30  ;;  %vm426_vm12 = vcmp.eq.s32.totalorder %v1458_v4, %v415_v39  ;;  %vm431_vm13 = vcmp.eq.s32.totalorder %v1464_v6, %v415_v39 }
  0x18   :  { %1194 = vmatmul.mubr.msk.f32.gmra.mrb[2].mxu0 %vm108_vm0, %v105_v35  ;;  %1324 = vmatprep.subr.msk.bf16.mxu1 %vm1533_vm11, %v1403_v30  ;;  %vm1321_vm14 = vmpackc.low %vm431_vm13, %vm426_vm12 }
  0x19   :  { %1202 = vmatmul.mubr.msk.f32.gmra.mrb[2].mxu1 %vm108_vm0, %v105_v35  ;;  %197 = vmatprep.mubr.f32.mxu0 %v1402_v2 }
  0x1a   :  { %286 = vmatprep.mubr.f32.mxu1 %v1402_v2  ;;  %759 = vperm.xlu0 %1356, %v755_v45  }
  0x1b   :  { %1017 = vperm.xlu1 %1357, %v1013_v46  }
  0x1c   :  { %1195 = vmatmul.mubr.msk.f32.gmra.mrb[4].mxu0 %vm108_vm0, %v106_v38 }
  0x1d   :  { %1203 = vmatmul.mubr.msk.f32.gmra.mrb[4].mxu1 %vm108_vm0, %v106_v38  ;;  %203 = vmatprep.mubr.f32.mxu0 %v1402_v2 }
  0x1e   :  { %292 = vmatprep.mubr.f32.mxu1 %v1402_v2  ;;  %764 = vperm.xlu0 %1356, %v756_v48  }
  0x1f   :  { %1022 = vperm.xlu1 %1357, %v1014_v49  }
  0x20   :  { %1196 = vmatmul.mubr.msk.f32.gmra.mrb[6].mxu0 %vm108_vm0, %v107_v40 }
  0x21   :  { %1204 = vmatmul.mubr.msk.f32.gmra.mrb[6].mxu1 %vm108_vm0, %v107_v40  ;;  %1276 = vmatprep.mubr.msk.f32.mxu0 %vm108_vm0, %v104_v31 }
  0x22   :  { %534 = vmatprep.mubr.f32.mxu1 %v1402_v2  ;;  %1073 = vperm.xlu0 %1356, %v1070_v50   ;;  %v753_v50 = vld [vmem:[%s1648_s3] sm:$0xff] }
  0x24   :  { %1277 = vmatmul.mubr.msk.f32.vlgmr.msra.gmra.mrb[8].mxu0 %vm108_vm0, %v105_v35 }
  0x25   :  { %1225 = vmatmul.mubr.msk.f32.vlgmr.msra.gmra.mrb[8].mxu1 %vm108_vm0, %v454_v41  ;;  %1322 = vmatpush1.bf16.msk.msra.mxu0 %vm1321_vm14, %v1403_v30 }
  0x26   :  { %1279 = vmatprep.mubr.msk.f32.mxu0 %vm108_vm0, %v106_v38  ;;  %540 = vmatprep.mubr.f32.mxu1 %v1402_v2 }
  0x27   :  { %1326 = vmatpush3.bf16.msk.msra.mxu1 %vm1533_vm11, %v1403_v30 }
  0x28   :  { %1280 = vmatmul.mubr.msk.f32.gmra.mrb[10].mxu0 %vm108_vm0, %v107_v40 }
  0x29   :  { %1226 = vmatmul.mubr.msk.f32.gmra.mrb[10].mxu1 %vm108_vm0, %v455_v42  ;;  %623 = vmatprep.mubr.f32.mxu0 %v1402_v2 }
  0x2a   :  { %546 = vmatprep.mubr.f32.mxu1 %v1402_v2 }
  0x2c   :  { %1233 = vmatmul.mubr.msk.f32.vlgmr.msra.gmra.mrb[12].mxu0 %vm108_vm0, %v454_v41 }
  0x2d   :  { %1227 = vmatmul.mubr.msk.f32.gmra.mrb[12].mxu1 %vm108_vm0, %v456_v43  ;;  %629 = vmatprep.mubr.f32.mxu0 %v1402_v2 }
  0x2e   :  { %552 = vmatprep.mubr.f32.mxu1 %v1402_v2 }
  0x30   :  { %1234 = vmatmul.mubr.msk.f32.gmra.mrb[14].mxu0 %vm108_vm0, %v455_v42 }
  0x31   :  { %1228 = vmatmul.mubr.msk.f32.gmra.mrb[14].mxu1 %vm108_vm0, %v457_v44  ;;  %635 = vmatprep.mubr.f32.mxu0 %v1402_v2 }
  0x32   :  { %1286 = vmatprep.mubr.msk.f32.mxu1 %vm108_vm0, %v454_v41 }
  0x34   :  { %1235 = vmatmul.mubr.msk.f32.gmra.mrb[16].mxu0 %vm108_vm0, %v456_v43 }
  0x35   :  { %1287 = vmatmul.mubr.msk.f32.vlgmr.msra.gmra.mrb[16].mxu1 %vm108_vm0, %v455_v42  ;;  %641 = vmatprep.mubr.f32.mxu0 %v1402_v2 }
  0x36   :  { %1289 = vmatprep.mubr.msk.f32.mxu1 %vm108_vm0, %v456_v43 }
  0x38   :  { %1236 = vmatmul.mubr.msk.f32.gmra.mrb[18].mxu0 %vm108_vm0, %v457_v44 }
  0x39   :  { %1290 = vmatmul.mubr.msk.f32.gmra.mrb[18].mxu1 %vm108_vm0, %v457_v44  ;;  %838 = vmatprep.mubr.f32.mxu0 %v1402_v2  ;;  %vm1162_vm0 = vcmp.lt.s32.totalorder %v31_v1, 640 }
  0x3a   :  { %915 = vmatprep.mubr.f32.mxu1 %v1402_v2 }
  0xe7   :  { %v187_v51 = vpop.f32.mrb[0].mxu0 }
  0xe8   :  { %v189_v52 = vpop.f32.mrb[1].mxu0  ;;  %v276_v53 = vpop.f32.mrb[0].mxu1 }
  0xe9   :  { %v278_v54 = vpop.f32.mrb[1].mxu1 }
  0xeb   :  { %v193_v55 = vpop.f32.mrb[2].mxu0 }
  0xec   :  { %v195_v56 = vpop.f32.mrb[3].mxu0  ;;  %v282_v57 = vpop.f32.mrb[2].mxu1 }
  0xed   :  { %v284_v58 = vpop.f32.mrb[3].mxu1 }
  0xef   :  { %v199_v59 = vpop.f32.mrb[4].mxu0 }
  0xf0   :  { %v201_v60 = vpop.f32.mrb[5].mxu0  ;;  %v288_v61 = vpop.f32.mrb[4].mxu1 }
  0xf1   :  { %v290_v62 = vpop.f32.mrb[5].mxu1 }
  0xf3   :  { %v205_v63 = vpop.f32.mrb[6].mxu0 }
  0xf4   :  { %v207_v0 = vpop.f32.mrb[7].mxu0  ;;  %v294_v3 = vpop.f32.mrb[6].mxu1 }
  0xf5   :  { %v296_v5 = vpop.f32.mrb[7].mxu1 }
  0xf7   :  { %v1278_v6 = vpop.f32.mrb[8].mxu0 }
  0xf8   :  { %v536_v8 = vpop.f32.mrb[8].mxu1  ;;  %v365_v9 = vpop.f32.mrb[9].mxu0 }
  0xf9   :  { %v733_v10 = vmul.f32 %v536_v8, %v187_v51  ;;  %v538_v11 = vpop.f32.mrb[9].mxu1 }
  0xfa   :  { %v734_v12 = vmul.f32 %v538_v11, %v189_v52 }
  0xfb   :  { %v1281_v13 = vpop.f32.mrb[10].mxu0 }
  0xfc   :  { %v542_v14 = vpop.f32.mrb[10].mxu1  ;;  %v375_v15 = vpop.f32.mrb[11].mxu0 }
  0xfd   :  { %v738_v16 = vmul.f32 %v542_v14, %v193_v55  ;;  %v544_v17 = vpop.f32.mrb[11].mxu1 }
  0xfe   :  { %v739_v18 = vmul.f32 %v544_v17, %v195_v56 }
  0xff   :  { %v1329_v19 = vpack.c.bf16 %v738_v16, %v733_v10  ;;  %v625_v20 = vpop.f32.mrb[12].mxu0 }
 0x100   :  { %v1327_v21 = vpack.c.bf16 %v739_v18, %v734_v12  ;;  %v548_v22 = vpop.f32.mrb[12].mxu1  ;;  %v735_v23 = vmul.f32 %v625_v20, %v276_v53  ;;  %v627_v24 = vpop.f32.mrb[13].mxu0 }
 0x101   :  { %v743_v25 = vmul.f32 %v548_v22, %v199_v59  ;;  %v550_v26 = vpop.f32.mrb[13].mxu1  ;;  %v736_v27 = vmul.f32 %v627_v24, %v278_v54 }
 0x102   :  { %v744_v28 = vmul.f32 %v550_v26, %v201_v60  ;;  %1328 = vmatprep.subr.bf16.mxu0 %v1327_v21 }
 0x103   :  { %1330 = vmatpush1.bf16.msra.mxu0 %v1329_v19  ;;  %v631_v29 = vpop.f32.mrb[14].mxu0 }
 0x104   :  { %v554_v30 = vpop.f32.mrb[14].mxu1  ;;  %v740_v31 = vmul.f32 %v631_v29, %v282_v57  ;;  %v633_v32 = vpop.f32.mrb[15].mxu0 }
 0x105   :  { %v748_v33 = vmul.f32 %v554_v30, %v205_v63  ;;  %v556_v34 = vpop.f32.mrb[15].mxu1  ;;  %v741_v35 = vmul.f32 %v633_v32, %v284_v58  ;;  %v760_v63 = vpop.permute.xlu0 %759 }
 0x106   :  { %v1337_v36 = vpack.c.bf16 %v740_v31, %v735_v23  ;;  %v749_v37 = vmul.f32 %v556_v34, %v207_v0 }
 0x107   :  { %v1333_v38 = vpack.c.bf16 %v748_v33, %v743_v25  ;;  %v1335_v39 = vpack.c.bf16 %v741_v35, %v736_v27  ;;  %v637_v40 = vpop.f32.mrb[16].mxu0 }
 0x108   :  { %v1331_v41 = vpack.c.bf16 %v749_v37, %v744_v28  ;;  %v745_v42 = vmul.f32 %v637_v40, %v288_v61  ;;  %v1288_v43 = vpop.f32.mrb[16].mxu1  ;;  %v639_v44 = vpop.f32.mrb[17].mxu0  ;;  %v754_v61 = vld [vmem:[%s1648_s3 + $0x8] sm:$0xff]  ;;  %s1406_s3 = smov [#allocation3]  }
 0x109   :  { %v742_v45 = vmul.f32 %v1288_v43, %v1278_v6  ;;  %v746_v46 = vmul.f32 %v639_v44, %v290_v62  ;;  %v714_v47 = vpop.f32.mrb[17].mxu1  ;;  %1336 = vmatprep.subr.bf16.mxu1 %v1335_v39  ;;  %s1171_s29 = sshll.u32 %s1406_s3, 4  ;;  %s1172_s29 = int_to_ptr.vmem [resolvable:$true] %s1171_s29 }
 0x10a   :  { %v737_v48 = vmul.f32 %v714_v47, %v365_v9  ;;  %1332 = vmatprep.subr.bf16.mxu0 %v1331_v41  ;;  %1338 = vmatpush1.bf16.msra.mxu1 %v1337_v36  ;;  %v765_v9 = vpop.permute.xlu0 %764  ;;  %s1378_s0 = scalar_lea.vmem %s1172_s29, 80  ;;  %s1382_s6 = scalar_lea.vmem %s1172_s29, 96 }
 0x10b   :  { %1334 = vmatpush1.bf16.msra.mxu0 %v1333_v38  ;;  %v643_v49 = vpop.f32.mrb[18].mxu0  ;;  %p1379_p0 = scmp.ne.s32.totalorder %s1172_s29, %s1378_s0  ;;  %p1383_p1 = scmp.lt.s32.totalorder %s1172_s29, %s1172_s29 }
 0x10c   :  { %v1343_v51 = vpack.c.bf16 %v742_v45, %v737_v48  ;;  %v750_v52 = vmul.f32 %v643_v49, %v294_v3  ;;  %v1291_v53 = vpop.f32.mrb[18].mxu1  ;;  %v645_v54 = vpop.f32.mrb[19].mxu0  ;;  %p1384_p2 = scmp.lt.s32.totalorder %s1382_s6, %s1378_s0 }
 0x10d   :  { %v752_v55 = vmul.f32 %v1291_v53, %v1281_v13  ;;  %v751_v56 = vmul.f32 %v645_v54, %v296_v5  ;;  %v724_v57 = vpop.f32.mrb[19].mxu1  ;;  %v1018_v3 = vpop.permute.xlu1 %1017 }
 0x10e   :  { %v1341_v58 = vpack.c.bf16 %v750_v52, %v745_v42  ;;  %v747_v59 = vmul.f32 %v724_v57, %v375_v15  ;;  %1243 = vmatmul.mubr.msk.f32.vlgmr.msra.gmra.mrb[20].mxu0 %vm767_vm15, %v753_v50  ;;  %1344 = vmatprep.subr.bf16.mxu0 %v1343_v51  ;;  %p1385_p3 = por %p1384_p2, %p1383_p1 }
 0x10f   :  { %v1339_v60 = vpack.c.bf16 %v751_v56, %v746_v46  ;;  %1346 = vmatpush3.bf16.msra.mxu0 %v1343_v51  ;;  %844 = vmatprep.mubr.f32.mxu0 %v1402_v2 }
 0x110   :  { %v1347_v62 = vpack.c.bf16 %v752_v55, %v747_v59  ;;  %p1386_p4 = pnand %p1385_p3, %p1379_p0 }
 0x111   :  { %1340 = vmatprep.subr.bf16.mxu1 %v1339_v60  ;;  %v1023_v16 = vpop.permute.xlu1 %1022  ;;  %v1074_v60 = vpop.permute.xlu0 %1073 }
 0x112   :  { %1244 = vmatmul.mubr.msk.f32.gmra.mrb[22].mxu0 %vm767_vm15, %v754_v61  ;;  %1348 = vmatprep.subr.bf16.mxu0 %v1347_v62 }
 0x113   :  { %1342 = vmatpush1.bf16.msra.mxu1 %v1341_v58  ;;  %1350 = vmatpush3.bf16.msra.mxu0 %v1347_v62 }
 0x114   :  { %1300 = vmatprep.mubr.msk.f32.mxu0 %vm767_vm15, %v753_v50 }
 0x116   :  { %1245 = vmatmul.mubr.msk.f32.vlgmr.msra.gmra.mrb[20].mxu1 %vm767_vm15, %v753_v50  ;;  %1301 = vmatmul.mubr.msk.f32.vlgmr.msra.gmra.mrb[24].mxu0 %vm767_vm15, %v754_v61 }
 0x117   :  { %921 = vmatprep.mubr.f32.mxu1 %v1402_v2 }
 0x11a   :  { %1246 = vmatmul.mubr.msk.f32.gmra.mrb[22].mxu1 %vm767_vm15, %v754_v61 }
 0x1e1   :  { %v840_v0 = vpop.f32.mrb[20].mxu0 }
 0x1e2   :  { %v841_v5 = vadd.f32 %v840_v0, %v760_v63  ;;  %v842_v6 = vpop.f32.mrb[21].mxu0 }
 0x1e3   :  { %v843_v8 = vadd.f32 %v842_v6, %v760_v63 }
 0x1e4   :  { %v1003_v10 = vmax.f32 %v841_v5, 0.0 }
 0x1e5   :  { %v1004_v11 = vmax.f32 %v843_v8, 0.0  ;;  %v846_v12 = vpop.f32.mrb[22].mxu0 }
 0x1e6   :  { %v847_v13 = vadd.f32 %v846_v12, %v765_v9  ;;  %v848_v14 = vpop.f32.mrb[23].mxu0  ;;  %v1025_v17 = vmul.f32 %v1018_v3, %v1003_v10 }
 0x1e7   :  { %v849_v15 = vadd.f32 %v848_v14, %v765_v9  ;;  %v1026_v19 = vmul.f32 %v1018_v3, %v1004_v11 }
 0x1e8   :  { %v1008_v18 = vmax.f32 %v847_v13, 0.0 }
 0x1e9   :  { %v1009_v2 = vmax.f32 %v849_v15, 0.0  ;;  %v917_v20 = vpop.f32.mrb[20].mxu1  ;;  %v1302_v21 = vpop.f32.mrb[24].mxu0 }
 0x1ea   :  { %v1030_v22 = vmul.f32 %v1023_v16, %v1008_v18  ;;  %v918_v23 = vadd.f32 %v917_v20, %v760_v63  ;;  %v1000_v24 = vadd.f32 %v1302_v21, %v765_v9  ;;  %v919_v25 = vpop.f32.mrb[21].mxu1  ;;  %v994_v26 = vpop.f32.mrb[25].mxu0 }
 0x1eb   :  { %v1031_v27 = vmul.f32 %v1023_v16, %v1009_v2  ;;  %v920_v28 = vadd.f32 %v919_v25, %v760_v63  ;;  %v995_v29 = vadd.f32 %v994_v26, %v760_v63 }
 0x1ec   :  { %v1035_v30 = vadd.f32 %v1030_v22, %v1025_v17  ;;  %v1012_v31 = vmax.f32 %v1000_v24, 0.0  ;;  %v1005_v36 = vmax.f32 %v918_v23, 0.0 }
 0x1ed   :  { %v1042_v32 = vadd.f32 %v1031_v27, %v1026_v19  ;;  %v1007_v33 = vmax.f32 %v995_v29, 0.0  ;;  %v923_v34 = vpop.f32.mrb[22].mxu1  ;;  %v1006_v41 = vmax.f32 %v920_v28, 0.0 }
 0x1ee   :  { %v1036_v35 = vrot.slane %v1035_v30, 4  ;;  %v1034_v37 = vmul.f32 %v1023_v16, %v1012_v31  ;;  %v924_v38 = vadd.f32 %v923_v34, %v765_v9  ;;  %v925_v39 = vpop.f32.mrb[23].mxu1  ;;  %v1027_v50 = vmul.f32 %v1018_v3, %v1005_v36 }
 0x1ef   :  { %v1043_v40 = vrot.slane %v1042_v32, 4  ;;  %v1029_v42 = vmul.f32 %v1018_v3, %v1007_v33  ;;  %v926_v43 = vadd.f32 %v925_v39, %v765_v9  ;;  %v1028_v53 = vmul.f32 %v1018_v3, %v1006_v41 }
 0x1f0   :  { %v1037_v44 = vadd.f32 %v1036_v35, %v1035_v30  ;;  %v1010_v45 = vmax.f32 %v924_v38, 0.0  ;;  %v1079_v9 = vrot.slane %v1074_v60, %v1467_v7 }
 0x1f1   :  { %v1044_v46 = vadd.f32 %v1043_v40, %v1042_v32  ;;  %v1063_v47 = vadd.f32 %v1034_v37, %v1029_v42  ;;  %v1011_v48 = vmax.f32 %v926_v43, 0.0  ;;  %v1405_v42 = vmov 1966171168  }
 0x1f2   :  { %v1038_v49 = vrot.slane %v1037_v44, 2  ;;  %v1032_v51 = vmul.f32 %v1023_v16, %v1010_v45  ;;  %v1123_v43 = vunpack.c.l.s4 %v1405_v42 }
 0x1f3   :  { %v1045_v52 = vrot.slane %v1044_v46, 2  ;;  %v1064_v54 = vrot.slane %v1063_v47, 4  ;;  %v1033_v55 = vmul.f32 %v1023_v16, %v1011_v48 }
 0x1f4   :  { %v1039_v56 = vadd.f32 %v1038_v49, %v1037_v44  ;;  %v1049_v57 = vadd.f32 %v1032_v51, %v1027_v50 }
 0x1f5   :  { %v1046_v58 = vadd.f32 %v1045_v52, %v1044_v46  ;;  %v1065_v59 = vadd.f32 %v1064_v54, %v1063_v47  ;;  %v1056_v61 = vadd.f32 %v1033_v55, %v1028_v53  ;;  %v1124_v46 = vunpack.c.0.s8 %v1123_v43 }
 0x1f6   :  { %v1040_v62 = vrot.slane %v1039_v56, 1  ;;  %v1050_v63 = vrot.slane %v1049_v57, 4 }
 0x1f7   :  { %v1047_v0 = vrot.slane %v1046_v58, 1  ;;  %v1066_v5 = vrot.slane %v1065_v59, 2  ;;  %v1057_v6 = vrot.slane %v1056_v61, 4  ;;  %v1127_v49 = vsub.s32 %v1124_v46, %v1458_v4 }
 0x1f8   :  { %v1041_v8 = vadd.f32 %v1040_v62, %v1039_v56  ;;  %v1051_v10 = vadd.f32 %v1050_v63, %v1049_v57 }
 0x1f9   :  { %v1048_v11 = vadd.f32 %v1047_v0, %v1046_v58  ;;  %v1067_v12 = vadd.f32 %v1066_v5, %v1065_v59  ;;  %v1058_v3 = vadd.f32 %v1057_v6, %v1056_v61 }
 0x1fa   :  { %v1080_v13 = vadd.f32 %v1079_v9, %v1041_v8  ;;  %v1052_v14 = vrot.slane %v1051_v10, 2 }
 0x1fb   :  { %v1068_v15 = vrot.slane %v1067_v12, 1  ;;  %v1081_v16 = vadd.f32 %v1079_v9, %v1048_v11  ;;  %v1059_v17 = vrot.slane %v1058_v3, 2 }
 0x1fc   :  { %v1249_v18 = vmul.f32 -1.442695, %v1080_v13  ;;  %v1053_v19 = vadd.f32 %v1052_v14, %v1051_v10 }
 0x1fd   :  { %v1069_v2 = vadd.f32 %v1068_v15, %v1067_v12  ;;  %v1250_v20 = vmul.f32 -1.442695, %v1081_v16  ;;  %v1060_v21 = vadd.f32 %v1059_v17, %v1058_v3 }
 0x1fe   :  { %1358 = vpow2.f32 %v1249_v18  ;;  %v1054_v22 = vrot.slane %v1053_v19, 1 }
 0x1ff   :  { %v1084_v23 = vadd.f32 %v1079_v9, %v1069_v2  ;;  %1360 = vpow2.f32 %v1250_v20  ;;  %v1061_v24 = vrot.slane %v1060_v21, 1 }
 0x200   :  { %v1055_v7 = vadd.f32 %v1054_v22, %v1053_v19 }
 0x201   :  { %v1253_v25 = vmul.f32 -1.442695, %v1084_v23  ;;  %v1062_v26 = vadd.f32 %v1061_v24, %v1060_v21 }
 0x202   :  { %v1082_v27 = vadd.f32 %v1079_v9, %v1055_v7 }
 0x203   :  { %1362 = vpow2.f32 %v1253_v25  ;;  %v1083_v28 = vadd.f32 %v1079_v9, %v1062_v26 }
 0x204   :  { %v1251_v29 = vmul.f32 -1.442695, %v1082_v27 }
 0x205   :  { %v1252_v30 = vmul.f32 -1.442695, %v1083_v28 }
 0x206   :  { %1364 = vpow2.f32 %v1251_v29 }
 0x207   :  { %1366 = vpow2.f32 %v1252_v30 }
 0x208   :  { %v1359_v31 = vpop.eup %1358 }
 0x209   :  { %v1361_v32 = vpop.eup %1360  ;;  %v1100_v33 = vadd.f32 1.0, %v1359_v31 }
 0x20a   :  { %v1101_v34 = vadd.f32 1.0, %v1361_v32 }
 0x20b   :  { %1368 = vrcp.f32 %v1100_v33 }
 0x20c   :  { %1370 = vrcp.f32 %v1101_v34 }
 0x20d   :  { %v1363_v35 = vpop.eup %1362 }
 0x20e   :  { %v1104_v36 = vadd.f32 1.0, %v1363_v35 }
 0x210   :  { %v1365_v37 = vpop.eup %1364  ;;  %1372 = vrcp.f32 %v1104_v36 }
 0x211   :  { %v1367_v38 = vpop.eup %1366  ;;  %v1102_v39 = vadd.f32 1.0, %v1365_v37 }
 0x212   :  { %v1103_v40 = vadd.f32 1.0, %v1367_v38 }
 0x213   :  { %1374 = vrcp.f32 %v1102_v39 }
 0x214   :  { %1376 = vrcp.f32 %v1103_v40 }
 0x215   :  { %v1369_v41 = vpop.eup %1368 }
 0x216   :  { %v1371_v44 = vpop.eup %1370 }
 0x217   :  { %v1120_v45 = vcombine.low %v1369_v41, %v1371_v44 }
 0x219   :  { %v1128_v52 = vrot.slane %v1120_v45, %v1127_v49 }
 0x21a   :  { %v1373_v47 = vpop.eup %1372 }
 0x21b   :  { %v1142_v54 = vrot.slane %v1373_v47, %v1127_v49 }
 0x21d   :  { %v1375_v48 = vpop.eup %1374  ;;  %v1157_v57 = vrot.slane %v1142_v54, %v1127_v49 }
 0x21e   :  { %v1377_v50 = vpop.eup %1376 }
 0x21f   :  { %v1121_v51 = vcombine.low %v1375_v48, %v1377_v50 }
 0x221   :  { %v1135_v53 = vrot.slane %v1121_v51, %v1127_v49 }
 0x223   :  { %v1143_v55 = vcombine.low %v1128_v52, %v1135_v53 }
 0x225   :  { %v1150_v56 = vrot.slane %v1143_v55, %v1127_v49 }
 0x227   :  { %v1158_v58 = vcombine.low %v1150_v56, %v1157_v57 }
 0x229   :  { %1164 = vst.msk [vmem:[#allocation3] sm:$0x1f] %vm1162_vm0, %v1158_v58 }
 0x22a   :  { %1389 = shalt.err (!%p1386_p4)
}
 0x22b   :  { %s1390_s9 = scalar_lea.hbm %s1652_s7, 80 }
 0x22c   :  { %p1391_p5 = scmp.ne.s32.totalorder %s1652_s7, %s1390_s9  ;;  %p1394_p6 = scmp.lt.u32.totalorder %s1390_s9, %s1652_s7 }
 0x22e   :  { %p1396_p7 = pnand %p1394_p6, %p1391_p5 }
 0x230   :  { %1399 = shalt.err (!%p1396_p7)
}
 0x231   :  { %1174 = dma.vmem_to_hbm [thread:$0]  %s1172_s29, 80, %s1652_s7, [#allocation4]  }
 0x232   :  { %1400 = dma.done.wait [#allocation4], 80  }
 0x233   :  { %1401 = vsyncadd [#allocation4], 4294967216 }
 0x234   :  { %1178 = vsyncpa [#allocation4], 1 }

</bundles_post_ra>
